<compile_context>
chip_gen: v7x
topology: tpu7x:2x2x1
jax: 0.10.0
libtpu: 0.0.40
codegen_flags: <defaults>
</compile_context>

<pallas_src>
import functools

import jax
import jax.numpy as jnp
import numpy as np
from jax.experimental import pallas as pl
from jax.experimental.pallas import tpu as pltpu

GAMMA = 0.5


def _smoothstep(z, gamma):
    """Elementwise cubic smooth-step, clamped to [0, 1]."""
    lower = -gamma / 2.0
    upper = gamma / 2.0
    c3 = -2.0 / (gamma ** 3)
    c1 = 3.0 / (2.0 * gamma)
    poly = c3 * z * z * z + c1 * z + 0.5
    return jnp.where(z <= lower, 0.0, jnp.where(z >= upper, 1.0, poly))


# ----------------------------------------------------------------------------- single gate
def _static_gate_kernel(alpha_ref, z_ref, out_ref, *, gamma):
    """alpha_ref: (k, 1), z_ref: (k, m), out_ref: (1, n) with n = 2**m."""
    a = alpha_ref[...]                      # (k, 1)
    z = z_ref[...]                          # (k, m)
    k, m = z.shape
    n = out_ref.shape[-1]

    s = _smoothstep(z, gamma)               # (k, m)
    one_minus_s = 1.0 - s

    # Binary expert codes generated in-kernel from a lane iota (no HBM input).
    # itertools.product ordering -> bit l of expert j is (j >> (m-1-l)) & 1.
    lane = jax.lax.broadcasted_iota(jnp.int32, (1, n), 1)            # (1, n)

    # selector: seed with the l = 0 factor (no ones constant), then fold in the rest.
    bit0 = ((lane >> (m - 1)) & 1) > 0
    probs = jnp.where(bit0, s[:, 0:1], one_minus_s[:, 0:1])          # (k, n)
    for l in range(1, m):                                            # m tiny & static
        bit = ((lane >> (m - 1 - l)) & 1) > 0
        probs = probs * jnp.where(bit, s[:, l:l + 1], one_minus_s[:, l:l + 1])

    # softmax over alpha (length k on the sublane axis).
    a_max = jnp.max(a, axis=0, keepdims=True)
    e = jnp.exp(a - a_max)
    denom = jnp.sum(e, axis=0, keepdims=True)
    w = e * pl.reciprocal(denom, approx=False)                       # (k, 1)

    # (1,k)x(k,n) mixture is far below MXU tile size -> keep on VPU/XLU.
    out_ref[...] = jnp.sum(w * probs, axis=0, keepdims=True)         # (1, n)


def static_gate_forward(alpha, Z, gamma=GAMMA):
    """Pallas StaticGate.forward(); alpha (k,), Z (k, m) -> mixture (2**m,).

    The single-gate call moves ~1 KB and is launch-boundary bound; no in-kernel
    change can recover that, so this path stays minimal (no grid, no pipelining,
    no wrapper-side packing).
    """
    # TODO(synk): for real G=1 deployments, fuse this gate into the consumer kernel
    # that applies the mixture instead of paying a standalone custom-call launch.
    k, m = Z.shape
    n = 2 ** m
    kernel = functools.partial(_static_gate_kernel, gamma=gamma)
    out = pl.pallas_call(
        kernel,
        out_shape=jax.ShapeDtypeStruct((1, n), jnp.float32),
        # No grid: single invocation, whole (tiny) arrays resident in VMEM.
    )(alpha.astype(jnp.float32).reshape(k, 1), Z.astype(jnp.float32))
    return out[0]


# ----------------------------------------------------------------------------- batched, gate-on-lane
def _static_gate_lanes_kernel(alpha_ref, z_ref, out_ref, *, gamma):
    """Gate-on-lane batched kernel.

    alpha_ref: (k, TG)      -- gate index on lanes
    z_ref:     (m, k, TG)   -- m leading so s[l] is a free leading-dim slice (full vreg)
    out_ref:   (n, TG)      -- lane-dense output rows (TG = 128 lanes)
    """
    a = alpha_ref[...]                       # (k, TG)
    z = z_ref[...]                           # (m, k, TG)
    m = z.shape[0]
    n = out_ref.shape[0]

    s = _smoothstep(z, gamma)                # (m, k, TG)
    one_minus_s = 1.0 - s

    # softmax over k (sublane axis), full lane width across gates.
    a_max = jnp.max(a, axis=0, keepdims=True)
    e = jnp.exp(a - a_max)
    denom = jnp.sum(e, axis=0, keepdims=True)
    # TODO(synk): pl.reciprocal(approx=True) + one Newton step would move this divide
    # to the otherwise-idle EUP slot, at the cost of a slightly looser tolerance.
    w = e * pl.reciprocal(denom, approx=False)                       # (k, TG)

    # Prefix-product tree over bits: experts sharing a bit-prefix share partial
    # products (2^(m+1)-4 multiplies instead of (m-1)*2^m), and the l=0 factor
    # seeds the tree. Ordering matches itertools.product([0,1], repeat=m):
    # partial[j] has bit l == (j >> (m-1-l)) & 1.
    partial = [one_minus_s[0], s[0]]                                 # each (k, TG)
    for l in range(1, m):                                            # m tiny & static
        nxt = []
        for p in partial:
            nxt.append(p * one_minus_s[l])
            nxt.append(p * s[l])
        partial = nxt                                                # len == 2**(l+1)

    # mixture rows: sublane reduction over k goes to the XLU (off the VALU slot).
    rows = [jnp.sum(w * partial[j], axis=0, keepdims=True) for j in range(n)]
    out_ref[...] = jnp.concatenate(rows, axis=0)                     # (n, TG)


def static_gate_forward_batched(alpha, Z, gamma=GAMMA, tg=128):
    """G independent gates in one pallas_call with the gate index on the lane axis.

    alpha: (G, k), Z: (G, k, m) -> (G, 2**m).

    TG = 128 gates per grid step: every VPU op runs full 128-lane width, output
    stores are unmasked 128-lane rows, and the ~600-cycle per-step overhead is
    amortized over 128 gates. The grid axis over gate blocks is "parallel" so
    v7x's two TensorCores split the blocks; on v5e/v6e it is a short serial loop.
    """
    G, k, m = Z.shape
    n = 2 ** m
    nb = pl.cdiv(G, tg)
    gp = nb * tg

    # Gate-on-lane layout: gate index becomes the fast (lane) axis; Z additionally
    # puts the bit index m leading so per-bit slices are free inside the kernel.
    # TODO(synk): in production store the parameters gate-last at init time so these
    # transposes/pads are not paid on every forward (they are plain XLA ops here).
    a_t = jnp.transpose(alpha.astype(jnp.float32), (1, 0))           # (k, G)
    z_t = jnp.transpose(Z.astype(jnp.float32), (2, 1, 0))            # (m, k, G)
    if gp != G:
        # Zero padding is numerically safe (softmax of zeros, smoothstep of zeros);
        # the padded tail gates are sliced off below.
        a_t = jnp.pad(a_t, ((0, 0), (0, gp - G)))
        z_t = jnp.pad(z_t, ((0, 0), (0, 0), (0, gp - G)))

    kernel = functools.partial(_static_gate_lanes_kernel, gamma=gamma)
    out = pl.pallas_call(
        kernel,
        out_shape=jax.ShapeDtypeStruct((n, gp), jnp.float32),
        grid=(nb,),
        in_specs=[
            pl.BlockSpec((k, tg), lambda g: (0, g)),                 # alpha block
            pl.BlockSpec((m, k, tg), lambda g: (0, 0, g)),           # Z block
        ],
        out_specs=pl.BlockSpec((n, tg), lambda g: (0, g)),           # lane-dense
        compiler_params=pltpu.CompilerParams(
            dimension_semantics=("parallel",)),
    )(a_t, z_t)
    return jnp.transpose(out[:, :G], (1, 0))                          # (G, n)


# ----------------------------------------------------------------------------- reference
def static_gate_ref(alpha, Z, gamma=GAMMA):
    """Pure-JAX reference matching the PyTorch semantics."""
    k, m = Z.shape
    n = 2 ** m
    lower, upper = -gamma / 2.0, gamma / 2.0
    c3, c1 = -2.0 / gamma ** 3, 3.0 / (2.0 * gamma)
    s = jnp.where(Z <= lower, 0.0,
                  jnp.where(Z >= upper, 1.0, c3 * Z ** 3 + c1 * Z + 0.5))      # (k, m)
    j = jnp.arange(n, dtype=jnp.int32)[None, :]
    shifts = (m - 1 - jnp.arange(m, dtype=jnp.int32))[:, None]
    codes = ((j >> shifts) & 1).astype(jnp.float32)                            # (m, n)
    factors = s[:, :, None] * codes[None] + (1.0 - s[:, :, None]) * (1.0 - codes[None])
    probs = jnp.prod(factors, axis=1)                                          # (k, n)
    weights = jax.nn.softmax(alpha)                                            # (k,)
    return weights @ probs                                                     # (n,)


if __name__ == "__main__":
    # Module config: k weighted trees, m bits -> 2^m leaf experts.
    k, m = 8, 4
    key = jax.random.PRNGKey(0)
    k1, k2, k3, k4 = jax.random.split(key, 4)
    alpha = jax.random.normal(k1, (k,), dtype=jnp.float32)      # nn.Parameter(torch.randn(k))
    Z = jax.random.normal(k2, (k, m), dtype=jnp.float32)        # nn.Parameter(torch.randn(k, m))

    # Single-gate forward (matches the PyTorch module exactly).
    mixture = jax.block_until_ready(static_gate_forward(alpha, Z, gamma=GAMMA))
    ref = static_gate_ref(alpha, Z, gamma=GAMMA)
    if not np.allclose(np.asarray(mixture), np.asarray(ref), rtol=1e-5, atol=1e-6):
        raise AssertionError(f"single-gate mismatch: pallas={mixture} ref={ref}")

    # Batched forward: G gates, gate-on-lane layout, 128 gates per grid step.
    # G = 200 is deliberately NOT a multiple of TG=128 (exercises the padded tail
    # block) and yields 2 grid steps (both v7x TensorCores get work).
    G = 200
    alpha_g = jax.random.normal(k3, (G, k), dtype=jnp.float32)
    Z_g = jax.random.normal(k4, (G, k, m), dtype=jnp.float32)
    mix_g = jax.block_until_ready(
        static_gate_forward_batched(alpha_g, Z_g, gamma=GAMMA, tg=128))
    ref_g = jax.vmap(lambda a, z: static_gate_ref(a, z, gamma=GAMMA))(alpha_g, Z_g)
    if not np.allclose(np.asarray(mix_g), np.asarray(ref_g), rtol=1e-5, atol=1e-6):
        err = np.max(np.abs(np.asarray(mix_g) - np.asarray(ref_g)))
        raise AssertionError(f"batched mismatch: max abs err = {err}")

    print("KERNEL_OK")
</pallas_src>

<mosaic_0001>
module attributes {stable_mosaic.version = 11 : i64} {
  func.func @_static_gate_kernel(%arg0: memref<8x1xf32, #tpu.memory_space<vmem>>, %arg1: memref<8x4xf32, #tpu.memory_space<vmem>>, %arg2: memref<1x16xf32, #tpu.memory_space<vmem>>) attributes {dimension_semantics = [], scalar_prefetch = 0 : i64, scratch_operands = 0 : i64, tpu.core_type = #tpu.core_type<tc>} {
    %c0 = arith.constant 0 : index
    %c0_0 = arith.constant 0 : index
    %0 = vector.load %arg0[%c0, %c0_0] : memref<8x1xf32, #tpu.memory_space<vmem>>, vector<8x1xf32>
    %c0_1 = arith.constant 0 : index
    %c0_2 = arith.constant 0 : index
    %1 = vector.load %arg1[%c0_1, %c0_2] : memref<8x4xf32, #tpu.memory_space<vmem>>, vector<8x4xf32>
    %cst = arith.constant -1.600000e+01 : f32
    %2 = vector.broadcast %cst : f32 to vector<8x4xf32>
    %3 = arith.mulf %2, %1 : vector<8x4xf32>
    %4 = arith.mulf %3, %1 : vector<8x4xf32>
    %5 = arith.mulf %4, %1 : vector<8x4xf32>
    %cst_3 = arith.constant 3.000000e+00 : f32
    %6 = vector.broadcast %cst_3 : f32 to vector<8x4xf32>
    %7 = arith.mulf %6, %1 : vector<8x4xf32>
    %8 = arith.addf %5, %7 : vector<8x4xf32>
    %cst_4 = arith.constant 5.000000e-01 : f32
    %9 = vector.broadcast %cst_4 : f32 to vector<8x4xf32>
    %10 = arith.addf %8, %9 : vector<8x4xf32>
    %cst_5 = arith.constant -2.500000e-01 : f32
    %11 = vector.broadcast %cst_5 : f32 to vector<8x4xf32>
    %12 = arith.cmpf ole, %1, %11 : vector<8x4xf32>
    %cst_6 = arith.constant 2.500000e-01 : f32
    %13 = vector.broadcast %cst_6 : f32 to vector<8x4xf32>
    %14 = arith.cmpf oge, %1, %13 : vector<8x4xf32>
    %cst_7 = arith.constant 1.000000e+00 : f32
    %15 = vector.broadcast %cst_7 : f32 to vector<8x4xf32>
    %16 = arith.select %14, %15, %10 : vector<8x4xi1>, vector<8x4xf32>
    %cst_8 = arith.constant 0.000000e+00 : f32
    %17 = vector.broadcast %cst_8 : f32 to vector<8x4xf32>
    %18 = arith.select %12, %17, %16 : vector<8x4xi1>, vector<8x4xf32>
    %cst_9 = arith.constant 1.000000e+00 : f32
    %19 = vector.broadcast %cst_9 : f32 to vector<8x4xf32>
    %20 = arith.subf %19, %18 : vector<8x4xf32>
    %21 = tpu.iota {dimensions = array<i32: 1>} : vector<1x16xi32>
    %c3_i32 = arith.constant 3 : i32
    %22 = vector.broadcast %c3_i32 : i32 to vector<1x16xi32>
    %23 = arith.shrsi %21, %22 : vector<1x16xi32>
    %c1_i32 = arith.constant 1 : i32
    %24 = vector.broadcast %c1_i32 : i32 to vector<1x16xi32>
    %25 = arith.andi %23, %24 : vector<1x16xi32>
    %c0_i32 = arith.constant 0 : i32
    %26 = vector.broadcast %c0_i32 : i32 to vector<1x16xi32>
    %27 = arith.cmpi sgt, %25, %26 : vector<1x16xi32>
    %28 = vector.extract_strided_slice %18 {offsets = [0, 0], sizes = [8, 1], strides = [1, 1]} : vector<8x4xf32> to vector<8x1xf32>
    %29 = vector.extract_strided_slice %20 {offsets = [0, 0], sizes = [8, 1], strides = [1, 1]} : vector<8x4xf32> to vector<8x1xf32>
    %30 = vector.shape_cast %27 : vector<1x16xi1> to vector<1x16xi1>
    %31 = vector.broadcast %30 : vector<1x16xi1> to vector<8x16xi1>
    %32 = vector.shape_cast %28 : vector<8x1xf32> to vector<8x1xf32>
    %33 = vector.broadcast %32 : vector<8x1xf32> to vector<8x16xf32>
    %34 = vector.shape_cast %29 : vector<8x1xf32> to vector<8x1xf32>
    %35 = vector.broadcast %34 : vector<8x1xf32> to vector<8x16xf32>
    %36 = arith.select %31, %33, %35 : vector<8x16xi1>, vector<8x16xf32>
    %c2_i32 = arith.constant 2 : i32
    %37 = vector.broadcast %c2_i32 : i32 to vector<1x16xi32>
    %38 = arith.shrsi %21, %37 : vector<1x16xi32>
    %c1_i32_10 = arith.constant 1 : i32
    %39 = vector.broadcast %c1_i32_10 : i32 to vector<1x16xi32>
    %40 = arith.andi %38, %39 : vector<1x16xi32>
    %c0_i32_11 = arith.constant 0 : i32
    %41 = vector.broadcast %c0_i32_11 : i32 to vector<1x16xi32>
    %42 = arith.cmpi sgt, %40, %41 : vector<1x16xi32>
    %43 = vector.extract_strided_slice %18 {offsets = [0, 1], sizes = [8, 1], strides = [1, 1]} : vector<8x4xf32> to vector<8x1xf32>
    %44 = vector.extract_strided_slice %20 {offsets = [0, 1], sizes = [8, 1], strides = [1, 1]} : vector<8x4xf32> to vector<8x1xf32>
    %45 = vector.shape_cast %42 : vector<1x16xi1> to vector<1x16xi1>
    %46 = vector.broadcast %45 : vector<1x16xi1> to vector<8x16xi1>
    %47 = vector.shape_cast %43 : vector<8x1xf32> to vector<8x1xf32>
    %48 = vector.broadcast %47 : vector<8x1xf32> to vector<8x16xf32>
    %49 = vector.shape_cast %44 : vector<8x1xf32> to vector<8x1xf32>
    %50 = vector.broadcast %49 : vector<8x1xf32> to vector<8x16xf32>
    %51 = arith.select %46, %48, %50 : vector<8x16xi1>, vector<8x16xf32>
    %52 = arith.mulf %36, %51 : vector<8x16xf32>
    %c1_i32_12 = arith.constant 1 : i32
    %53 = vector.broadcast %c1_i32_12 : i32 to vector<1x16xi32>
    %54 = arith.shrsi %21, %53 : vector<1x16xi32>
    %c1_i32_13 = arith.constant 1 : i32
    %55 = vector.broadcast %c1_i32_13 : i32 to vector<1x16xi32>
    %56 = arith.andi %54, %55 : vector<1x16xi32>
    %c0_i32_14 = arith.constant 0 : i32
    %57 = vector.broadcast %c0_i32_14 : i32 to vector<1x16xi32>
    %58 = arith.cmpi sgt, %56, %57 : vector<1x16xi32>
    %59 = vector.extract_strided_slice %18 {offsets = [0, 2], sizes = [8, 1], strides = [1, 1]} : vector<8x4xf32> to vector<8x1xf32>
    %60 = vector.extract_strided_slice %20 {offsets = [0, 2], sizes = [8, 1], strides = [1, 1]} : vector<8x4xf32> to vector<8x1xf32>
    %61 = vector.shape_cast %58 : vector<1x16xi1> to vector<1x16xi1>
    %62 = vector.broadcast %61 : vector<1x16xi1> to vector<8x16xi1>
    %63 = vector.shape_cast %59 : vector<8x1xf32> to vector<8x1xf32>
    %64 = vector.broadcast %63 : vector<8x1xf32> to vector<8x16xf32>
    %65 = vector.shape_cast %60 : vector<8x1xf32> to vector<8x1xf32>
    %66 = vector.broadcast %65 : vector<8x1xf32> to vector<8x16xf32>
    %67 = arith.select %62, %64, %66 : vector<8x16xi1>, vector<8x16xf32>
    %68 = arith.mulf %52, %67 : vector<8x16xf32>
    %c0_i32_15 = arith.constant 0 : i32
    %69 = vector.broadcast %c0_i32_15 : i32 to vector<1x16xi32>
    %70 = arith.shrsi %21, %69 : vector<1x16xi32>
    %c1_i32_16 = arith.constant 1 : i32
    %71 = vector.broadcast %c1_i32_16 : i32 to vector<1x16xi32>
    %72 = arith.andi %70, %71 : vector<1x16xi32>
    %c0_i32_17 = arith.constant 0 : i32
    %73 = vector.broadcast %c0_i32_17 : i32 to vector<1x16xi32>
    %74 = arith.cmpi sgt, %72, %73 : vector<1x16xi32>
    %75 = vector.extract_strided_slice %18 {offsets = [0, 3], sizes = [8, 1], strides = [1, 1]} : vector<8x4xf32> to vector<8x1xf32>
    %76 = vector.extract_strided_slice %20 {offsets = [0, 3], sizes = [8, 1], strides = [1, 1]} : vector<8x4xf32> to vector<8x1xf32>
    %77 = vector.shape_cast %74 : vector<1x16xi1> to vector<1x16xi1>
    %78 = vector.broadcast %77 : vector<1x16xi1> to vector<8x16xi1>
    %79 = vector.shape_cast %75 : vector<8x1xf32> to vector<8x1xf32>
    %80 = vector.broadcast %79 : vector<8x1xf32> to vector<8x16xf32>
    %81 = vector.shape_cast %76 : vector<8x1xf32> to vector<8x1xf32>
    %82 = vector.broadcast %81 : vector<8x1xf32> to vector<8x16xf32>
    %83 = arith.select %78, %80, %82 : vector<8x16xi1>, vector<8x16xf32>
    %84 = arith.mulf %68, %83 : vector<8x16xf32>
    %cst_18 = arith.constant dense<0xFF800000> : vector<1xf32>
    %85 = vector.multi_reduction <maximumf>, %0, %cst_18 [0] : vector<8x1xf32> to vector<1xf32>
    %86 = vector.shape_cast %85 : vector<1xf32> to vector<1x1xf32>
    %87 = vector.broadcast %86 : vector<1x1xf32> to vector<8x1xf32>
    %88 = arith.subf %0, %87 : vector<8x1xf32>
    %89 = math.exp %88 : vector<8x1xf32>
    %cst_19 = arith.constant dense<0.000000e+00> : vector<1xf32>
    %90 = vector.multi_reduction <add>, %89, %cst_19 [0] : vector<8x1xf32> to vector<1xf32>
    %91 = vector.shape_cast %90 : vector<1xf32> to vector<1x1xf32>
    %92 = tpu.reciprocal %91 : vector<1x1xf32> -> vector<1x1xf32>
    %93 = vector.broadcast %92 : vector<1x1xf32> to vector<8x1xf32>
    %94 = arith.mulf %89, %93 : vector<8x1xf32>
    %95 = vector.broadcast %94 : vector<8x1xf32> to vector<8x16xf32>
    %96 = arith.mulf %95, %84 : vector<8x16xf32>
    %cst_20 = arith.constant dense<0.000000e+00> : vector<16xf32>
    %97 = vector.multi_reduction <add>, %96, %cst_20 [0] : vector<8x16xf32> to vector<16xf32>
    %98 = vector.shape_cast %97 : vector<16xf32> to vector<1x16xf32>
    %c0_21 = arith.constant 0 : index
    %c0_22 = arith.constant 0 : index
    %99 = vector.load %arg2[%c0_21, %c0_22] : memref<1x16xf32, #tpu.memory_space<vmem>>, vector<1x16xf32>
    tpu.vector_store %arg2[%c0_21, %c0_22], %98 {strides = array<i32>} : memref<1x16xf32, #tpu.memory_space<vmem>>, vector<1x16xf32>,
    return
  }
}

</mosaic_0001>

<bundles_post_ra>
// kernel: tpu_custom_call.1
= control target key start
LH: loop header
LB: loop body
LE: loop exit
PB: predicated region body
PF: predicated region fallthrough
CT: control target
= control target key end

     0   :  { %v179_v2 = vmov 0   ;;  %v180_v3 = vmov 1   ;;  %s219_s0 = inlined_call_operand.vmem [shape: f32[8,1], index: 0, kind: input, shape index: {}]   ;;  %s220_s1 = inlined_call_operand.vmem [shape: f32[8,4], index: 1, kind: input, shape index: {}]   ;;  %s221_s2 = inlined_call_operand.hbm [shape: f32[1,16], index: 2, kind: output, shape index: {}]  }
   0x1   :  { %v13_v0 = vld [vmem:[%s220_s1] sm:$0xff]  ;;  %142 = vset.pattern.permute.xlu0 %v179_v2  ;;  %143 = vset.pattern.permute.xlu1 %v180_v3 }
   0x2   :  { %v12_v1 = vld [vmem:[%s219_s0] sm:$0xff]  ;;  %v14_v4 = vmul.f32 -16.0, %v13_v0 }
   0x3   :  { %7 = vsyncpa [#allocation3], 0  ;;  %vm87_vm0 = vcmask 7168   ;;  %v17_v6 = vmul.f32 3.0, %v13_v0  ;;  %vm21_vm1 = vcmp.ge.f32.partialorder %v13_v0, 0.25  ;;  %vm20_vm2 = vcmp.le.f32.partialorder %v13_v0, -0.25 }
   0x4   :  { %v15_v5 = vmul.f32 %v14_v4, %v13_v0  ;;  %v88_v7 = vsel %vm87_vm0, %v12_v1, -inf  ;;  %v181_v21 = vmov 2   ;;  %v182_v23 = vmov 3   ;;  %s183_s0 = smov [#allocation2]  }
   0x5   :  { %v89_v8 = vrot.slane %v88_v7, 4  ;;  %v25_v34 = vlaneseq  ;;  %vm113_vm7 = vcmask 130048   ;;  %s129_s1 = sshll.u32 %s183_s0, 4  ;;  %vm121_vm8 = vcmask 122880   ;;  %s130_s1 = int_to_ptr.vmem [resolvable:$true] %s129_s1 }
   0x6   :  { %v16_v9 = vmul.f32 %v15_v5, %v13_v0  ;;  %s155_s13 = scalar_lea.vmem %s130_s1, 16  ;;  %s159_s14 = scalar_lea.vmem %s130_s1, 32 }
   0x7   :  { %v90_v10 = vmax.f32 %v88_v7, %v89_v8  ;;  %v26_v36 = vand.u32 127, %v25_v34  ;;  %p156_p0 = scmp.ne.s32.totalorder %s130_s1, %s155_s13  ;;  %p160_p1 = scmp.lt.s32.totalorder %s130_s1, %s130_s1 }
   0x8   :  { %v18_v11 = vadd.f32 %v17_v6, %v16_v9  ;;  %p161_p2 = scmp.lt.s32.totalorder %s159_s14, %s155_s13 }
   0x9   :  { %v91_v12 = vrot.slane %v90_v10, 2  ;;  %v43_v38 = vshra.s32 %v26_v36, 2  ;;  %v27_v39 = vshra.s32 %v26_v36, 3  ;;  %v58_v43 = vshra.s32 %v26_v36, 1 }
   0xa   :  { %v19_v13 = vadd.f32 0.5, %v18_v11  ;;  %v73_v50 = vand.u32 1, %v26_v36  ;;  %p162_p3 = por %p161_p2, %p160_p1 }
   0xb   :  { %v92_v14 = vmax.f32 %v90_v10, %v91_v12  ;;  %v44_v41 = vand.u32 1, %v43_v38  ;;  %v28_v44 = vand.u32 1, %v27_v39  ;;  %v59_v45 = vand.u32 1, %v58_v43 }
   0xc   :  { %v22_v15 = vsel %vm21_vm1, 1.0, %v19_v13  ;;  %vm74_vm6 = vcmp.gt.s32.totalorder %v73_v50, 0  ;;  %p163_p4 = pnand %p162_p3, %p156_p0 }
   0xd   :  { %v23_v16 = vsel %vm20_vm2, 0.0, %v22_v15  ;;  %v93_v17 = vrot.slane %v92_v14, 1  ;;  %vm45_vm3 = vcmp.gt.s32.totalorder %v44_v41, 0  ;;  %vm29_vm4 = vcmp.gt.s32.totalorder %v28_v44, 0 }
   0xe   :  { %34 = vperm.xlu0 %142, %v23_v16   ;;  %49 = vperm.xlu1 %143, %v23_v16   ;;  %v24_v18 = vsub.f32 1.0, %v23_v16  ;;  %vm60_vm5 = vcmp.gt.s32.totalorder %v59_v45, 0 }
   0xf   :  { %v94_v19 = vmax.f32 %v92_v14, %v93_v17 }
  0x11   :  { %v95_v20 = vsub.f32 %v12_v1, %v94_v19 }
  0x12   :  { %144 = vset.pattern.permute.xlu0 %v181_v21  ;;  %53 = vperm.xlu1 %143, %v24_v18  }
  0x13   :  { %64 = vperm.xlu0 %144, %v23_v16   ;;  %v96_v22 = vmul.f32 1.442695, %v95_v20 }
  0x15   :  { %151 = vpow2.f32 %v96_v22 }
  0x16   :  { %146 = vset.pattern.permute.xlu1 %v181_v21 }
  0x17   :  { %145 = vset.pattern.permute.xlu0 %v179_v2  ;;  %68 = vperm.xlu1 %146, %v24_v18  }
  0x18   :  { %39 = vperm.xlu0 %145, %v24_v18  }
  0x1b   :  { %147 = vset.pattern.permute.xlu1 %v182_v23 }
  0x1c   :  { %148 = vset.pattern.permute.xlu0 %v182_v23  ;;  %78 = vperm.xlu1 %147, %v23_v16  }
  0x1d   :  { %82 = vperm.xlu0 %148, %v24_v18  }
  0x1f   :  { %v152_v24 = vpop.eup %151 }
  0x20   :  { %149 = vset.pattern.permute.xlu1 %v179_v2  ;;  %v98_v25 = vsel %vm87_vm0, %v152_v24, 0.0 }
  0x21   :  { %v99_v26 = vrot.slane %v98_v25, 4  ;;  %150 = vset.pattern.permute.xlu0 %v179_v2 }
  0x23   :  { %v100_v27 = vadd.f32 %v99_v26, %v98_v25 }
  0x25   :  { %v101_v28 = vrot.slane %v100_v27, 2 }
  0x27   :  { %v102_v29 = vadd.f32 %v101_v28, %v100_v27 }
  0x29   :  { %v103_v30 = vrot.slane %v102_v29, 1 }
  0x2b   :  { %v104_v31 = vadd.f32 %v103_v30, %v102_v29 }
  0x2d   :  { %153 = vrcp.f32 %v104_v31 }
  0x37   :  { %v154_v32 = vpop.eup %153 }
  0x38   :  { %v106_v33 = vmul.f32 %v154_v32, %v152_v24 }
  0x3a   :  { %109 = vperm.xlu1 %149, %v106_v33  }
  0x8d   :  { %v35_v35 = vpop.permute.xlu0 %34  ;;  %v50_v37 = vpop.permute.xlu1 %49 }
  0x91   :  { %v54_v42 = vpop.permute.xlu1 %53 }
  0x92   :  { %v65_v40 = vpop.permute.xlu0 %64  ;;  %v56_v48 = vsel %vm45_vm3, %v50_v37, %v54_v42 }
  0x96   :  { %v69_v47 = vpop.permute.xlu1 %68 }
  0x97   :  { %v40_v46 = vpop.permute.xlu0 %39  ;;  %v71_v52 = vsel %vm60_vm5, %v65_v40, %v69_v47 }
  0x98   :  { %v42_v49 = vsel %vm29_vm4, %v35_v35, %v40_v46 }
  0x99   :  { %v57_v51 = vmul.f32 %v56_v48, %v42_v49 }
  0x9b   :  { %v79_v53 = vpop.permute.xlu1 %78  ;;  %v72_v55 = vmul.f32 %v71_v52, %v57_v51 }
  0x9c   :  { %v83_v54 = vpop.permute.xlu0 %82 }
  0x9d   :  { %v85_v56 = vsel %vm74_vm6, %v79_v53, %v83_v54 }
  0x9e   :  { %v86_v57 = vmul.f32 %v85_v56, %v72_v55 }
  0xb9   :  { %v110_v58 = vpop.permute.xlu1 %109 }
  0xba   :  { %v112_v59 = vmul.f32 %v110_v58, %v86_v57 }
  0xbc   :  { %v114_v60 = vsel %vm113_vm7, %v112_v59, 0.0 }
  0xbd   :  { %v115_v61 = vrot.slane %v114_v60, 4 }
  0xbf   :  { %v116_v62 = vadd.f32 %v115_v61, %v114_v60 }
  0xc1   :  { %v117_v63 = vrot.slane %v116_v62, 2 }
  0xc3   :  { %v118_v0 = vadd.f32 %v117_v63, %v116_v62 }
  0xc5   :  { %v119_v1 = vrot.slane %v118_v0, 1 }
  0xc7   :  { %v120_v2 = vadd.f32 %v119_v1, %v118_v0 }
  0xc9   :  { %122 = vst.msk [vmem:[#allocation2] sm:$0x1] %vm121_vm8, %v120_v2 }
  0xca   :  { %166 = shalt.err (!%p163_p4)
}
  0xcb   :  { %s167_s17 = scalar_lea.hbm %s221_s2, 16 }
  0xcc   :  { %p168_p5 = scmp.ne.s32.totalorder %s221_s2, %s167_s17  ;;  %p171_p6 = scmp.lt.u32.totalorder %s167_s17, %s221_s2 }
  0xce   :  { %p173_p7 = pnand %p171_p6, %p168_p5 }
  0xd0   :  { %176 = shalt.err (!%p173_p7)
}
  0xd1   :  { %132 = dma.vmem_to_hbm [thread:$0]  %s130_s1, 16, %s221_s2, [#allocation3]  }
  0xd2   :  { %177 = dma.done.wait [#allocation3], 16  }
  0xd3   :  { %178 = vsyncadd [#allocation3], 4294967280 }
  0xd4   :  { %136 = vsyncpa [#allocation3], 1 }

</bundles_post_ra>
